<compile_context>
chip_gen: v7x
topology: tpu7x:2x2x1
jax: 0.10.0
libtpu: 0.0.40
codegen_flags: <defaults>
</compile_context>

<pallas_src>
import jax
import jax.numpy as jnp
import numpy as np
from jax.experimental import pallas as pl
from jax.experimental.pallas import tpu as pltpu


def _round_up(x, m):
    return (x + m - 1) // m * m


def _pow2_tile(n, target):
    """Largest power-of-two multiple of 128 that is <= min(target, n)."""
    t = 128
    while t * 2 <= min(target, n):
        t *= 2
    return t


# --------------- Stage 1: support = x @ W  (tiled f_in reduction) ----------

def _support_kernel(x_ref, w_ref, out_ref, acc_ref):
    k = pl.program_id(1)

    @pl.when(k == 0)
    def _():
        acc_ref[...] = jnp.zeros_like(acc_ref)

    acc_ref[...] += jnp.dot(x_ref[...], w_ref[...],
                            preferred_element_type=jnp.float32)

    @pl.when(k == pl.num_programs(1) - 1)
    def _():
        out_ref[...] = acc_ref[...].astype(out_ref.dtype)


# --------------- Stage 2: out = relu(adj @ support) ------------------------

def _aggregate_kernel(adj_ref, s_ref, out_ref):
    # out[i,:] = relu( sum_k adj[i, k-tile] @ support[k-tile, :] )
    # Accumulates directly into the resident f32 output block (no scratch).
    k = pl.program_id(1)
    tk = adj_ref.shape[1]

    @pl.when(k == 0)
    def _():
        out_ref[...] = jnp.zeros_like(out_ref)

    if s_ref.shape[0] == tk:
        # Streamed support: this grid step's (tk, F) tile was DMA'd for us.
        s_blk = s_ref[...]
    else:
        # Resident support: full (n_p, F) array lives in VMEM; slice the k-tile.
        start = pl.multiple_of(k * tk, tk)
        s_blk = s_ref[pl.ds(start, tk), :]

    # adj streams in its HBM dtype (f32 or bf16); cast in vregs so the MXU
    # runs the bf16 fast path. f32 accumulation via preferred_element_type.
    out_ref[...] += jnp.dot(adj_ref[...].astype(s_blk.dtype), s_blk,
                            preferred_element_type=jnp.float32)

    @pl.when(k == pl.num_programs(1) - 1)
    def _():
        out_ref[...] = jnp.maximum(out_ref[...], 0.0)


def graph_convolution(x, weight, adj, *,
                      compute_dtype=jnp.bfloat16,
                      block_rows=512, block_k=2048,
                      support_resident_bytes=4 * 1024 * 1024):
    """relu(adj @ (x @ weight)) -- adj is the streamed, HBM-bound operand."""
    N, f_in = x.shape
    assert weight.shape[0] == f_in, "weight/in_features mismatch"
    f_out = weight.shape[1]
    out_dtype = x.dtype
    cdt = jnp.dtype(compute_dtype)

    # ---- Tile / padding selection -----------------------------------------
    f_out_p = _round_up(max(f_out, 128), 128)        # lane-dense output (>=128)
    n128 = _round_up(max(N, 128), 128)

    tk = _pow2_tile(n128, block_k)                   # adj reduction (col) tile
    while tk > 128 and _round_up(n128, tk) - n128 > n128 // 8:
        tk //= 2                                     # cap padding overhead
    tm = _pow2_tile(max(n128 // 4, 128), block_rows)  # >=4 row tiles (megacore)
    while tm > 128 and _round_up(n128, tm) - n128 > n128 // 8:
        tm //= 2
    n_p = _round_up(n128, max(tm, tk))               # multiple of both tm & tk

    tk_in = _pow2_tile(_round_up(max(f_in, 128), 128), 512)
    f_in_p = _round_up(max(f_in, 128), tk_in)

    # ---- Operand prep (zero extra HBM passes over adj on the aligned path) -
    x_p = jnp.pad(x.astype(compute_dtype),
                  ((0, n_p - N), (0, f_in_p - f_in)))
    w_p = jnp.pad(weight.astype(compute_dtype),
                  ((0, f_in_p - f_in), (0, f_out_p - f_out)))
    if n_p == N:
        adj_s = adj          # stream as-is (f32 or pre-cast bf16); cast in-kernel
    else:
        adj_s = jnp.pad(adj.astype(compute_dtype),
                        ((0, n_p - N), (0, n_p - N)))
    adj_bytes = jnp.dtype(adj_s.dtype).itemsize

    # ---- Stage 1: support = x @ W (bf16 result) ----------------------------
    support = pl.pallas_call(
        _support_kernel,
        out_shape=jax.ShapeDtypeStruct((n_p, f_out_p), compute_dtype),
        grid=(n_p // tm, f_in_p // tk_in),
        in_specs=[
            pl.BlockSpec((tm, tk_in), lambda i, k: (i, k)),
            pl.BlockSpec((tk_in, f_out_p), lambda i, k: (k, 0)),
        ],
        out_specs=pl.BlockSpec((tm, f_out_p), lambda i, k: (i, 0)),
        scratch_shapes=[pltpu.VMEM((tm, f_out_p), jnp.float32)],
        compiler_params=pltpu.CompilerParams(
            dimension_semantics=("parallel", "arbitrary")),
        cost_estimate=pl.CostEstimate(
            flops=2 * n_p * f_in_p * f_out_p,
            transcendentals=0,
            bytes_accessed=cdt.itemsize * (n_p * f_in_p
                                           + (n_p // tm) * f_in_p * f_out_p
                                           + n_p * f_out_p)),
    )(x_p, w_p)

    # ---- Stage 2: out = relu(adj @ support), adj streamed tile-by-tile -----
    support_bytes = n_p * f_out_p * cdt.itemsize
    resident = support_bytes <= support_resident_bytes
    if resident:
        # DMA'd once (constant block index) and held in VMEM for the whole grid.
        s_spec = pl.BlockSpec((n_p, f_out_p), lambda i, k: (0, 0))
        s_read_bytes = support_bytes
        s_vmem = 2 * support_bytes
    else:
        s_spec = pl.BlockSpec((tk, f_out_p), lambda i, k: (k, 0))
        s_read_bytes = (n_p // tm) * support_bytes      # re-streamed per row tile
        s_vmem = 2 * tk * f_out_p * cdt.itemsize

    vmem_est = (2 * tm * tk * adj_bytes                 # double-buffered adj
                + s_vmem
                + 2 * tm * f_out_p * 4)                 # resident f32 out block
    vmem_limit = int(min(max(2 * vmem_est, 32 << 20), 48 << 20))

    out_p = pl.pallas_call(
        _aggregate_kernel,
        out_shape=jax.ShapeDtypeStruct((n_p, f_out_p), jnp.float32),
        grid=(n_p // tm, n_p // tk),
        in_specs=[
            pl.BlockSpec((tm, tk), lambda i, k: (i, k)),
            s_spec,
        ],
        out_specs=pl.BlockSpec((tm, f_out_p), lambda i, k: (i, 0)),
        compiler_params=pltpu.CompilerParams(
            dimension_semantics=("parallel", "arbitrary"),
            vmem_limit_bytes=vmem_limit),
        cost_estimate=pl.CostEstimate(
            flops=2 * n_p * n_p * f_out_p,
            transcendentals=0,
            bytes_accessed=adj_bytes * n_p * n_p + s_read_bytes
                           + 4 * n_p * f_out_p),
    )(adj_s, support)

    out = out_p[:N, :f_out]
    return out if out_dtype == jnp.float32 else out.astype(out_dtype)


def xavier_uniform(key, fan_in, fan_out, dtype=jnp.float32):
    # Matches torch.nn.init.xavier_uniform_ (gain=1.0)
    bound = float(np.sqrt(6.0 / (fan_in + fan_out)))
    return jax.random.uniform(key, (fan_in, fan_out), dtype=dtype,
                              minval=-bound, maxval=bound)


if __name__ == "__main__":
    key = jax.random.PRNGKey(0)
    k_x, k_adj, k_w = jax.random.split(key, 3)

    N = 256            # graph nodes (tile-aligned -> zero-copy adj fast path)
    in_features = 96
    out_features = 80
    dropout = 0.5      # unused in eval-mode forward

    x = jax.random.normal(k_x, (N, in_features), dtype=jnp.float32)

    # Symmetric, row-normalized adjacency with self-loops (typical GCN input).
    a = jax.random.uniform(k_adj, (N, N), dtype=jnp.float32)
    a = (a > 0.9).astype(jnp.float32)
    a = jnp.maximum(a, a.T) + jnp.eye(N, dtype=jnp.float32)
    adj = a / jnp.sum(a, axis=1, keepdims=True)

    weight = xavier_uniform(k_w, in_features, out_features)

    out = graph_convolution(x, weight, adj)
    out = jax.block_until_ready(out)
    assert out.shape == (N, out_features) and out.dtype == jnp.float32

    # Reference with matched bf16-input precision (f32 accumulation).
    xb = x.astype(jnp.bfloat16)
    wb = weight.astype(jnp.bfloat16)
    support_ref = jnp.dot(xb, wb, preferred_element_type=jnp.float32)
    ref = jnp.maximum(
        jnp.dot(adj.astype(jnp.bfloat16), support_ref.astype(jnp.bfloat16),
                preferred_element_type=jnp.float32), 0.0)
    np.testing.assert_allclose(np.asarray(out), np.asarray(ref),
                               rtol=2e-2, atol=2e-2)

    # Sanity check against the pure-f32 reference (bf16 streaming error only).
    ref_f32 = jnp.maximum(adj @ (x @ weight), 0.0)
    np.testing.assert_allclose(np.asarray(out), np.asarray(ref_f32),
                               rtol=5e-2, atol=5e-2)

    print("KERNEL_OK")
</pallas_src>

<mosaic_0001>
module attributes {stable_mosaic.version = 11 : i64} {
  func.func @_support_kernel(%arg0: i32, %arg1: i32, %arg2: memref<128x128xbf16, #tpu.memory_space<vmem>>, %arg3: memref<128x128xbf16, #tpu.memory_space<vmem>>, %arg4: memref<128x128xbf16, #tpu.memory_space<vmem>>, %arg5: memref<128x128xf32, #tpu.memory_space<vmem>>) attributes {dimension_semantics = [#tpu.dimension_semantics<parallel>, #tpu.dimension_semantics<arbitrary>], iteration_bounds = array<i64: 2, 1>, scalar_prefetch = 0 : i64, scratch_operands = 1 : i64, tpu.core_type = #tpu.core_type<tc>, window_params = [{transform_indices = @transform_0, window_bounds = array<i64: 128, 128>}, {transform_indices = @transform_1, window_bounds = array<i64: 128, 128>}, {transform_indices = @transform_2, window_bounds = array<i64: 128, 128>}]} {
    %c0_i32 = arith.constant 0 : i32
    %0 = arith.cmpi eq, %arg1, %c0_i32 : i32
    %1 = arith.extui %0 : i1 to i32
    %c0_i32_0 = arith.constant 0 : i32
    %2 = arith.cmpi ne, %1, %c0_i32_0 : i32
    scf.if %2 {
      %cst_10 = arith.constant 0.000000e+00 : f32
      %12 = vector.broadcast %cst_10 : f32 to vector<128x128xf32>
      %c0_11 = arith.constant 0 : index
      %c0_12 = arith.constant 0 : index
      %13 = vector.load %arg5[%c0_11, %c0_12] : memref<128x128xf32, #tpu.memory_space<vmem>>, vector<128x128xf32>
      tpu.vector_store %arg5[%c0_11, %c0_12], %12 {strides = array<i32>} : memref<128x128xf32, #tpu.memory_space<vmem>>, vector<128x128xf32>,
    } else {
    }
    %c0 = arith.constant 0 : index
    %c0_1 = arith.constant 0 : index
    %3 = vector.load %arg5[%c0, %c0_1] : memref<128x128xf32, #tpu.memory_space<vmem>>, vector<128x128xf32>
    %c0_2 = arith.constant 0 : index
    %c0_3 = arith.constant 0 : index
    %4 = vector.load %arg2[%c0_2, %c0_3] : memref<128x128xbf16, #tpu.memory_space<vmem>>, vector<128x128xbf16>
    %c0_4 = arith.constant 0 : index
    %c0_5 = arith.constant 0 : index
    %5 = vector.load %arg3[%c0_4, %c0_5] : memref<128x128xbf16, #tpu.memory_space<vmem>>, vector<128x128xbf16>
    %cst = arith.constant dense<0.000000e+00> : vector<128x128xf32>
    %6 = tpu.matmul %4, %5, %cst {dimension_numbers = #tpu.dot_dimension_numbers<[1], [0], [0], [1], [0, 0, 1, 1], [], []>} : vector<128x128xbf16>, vector<128x128xbf16>, vector<128x128xf32> -> vector<128x128xf32>
    %7 = arith.addf %3, %6 : vector<128x128xf32>
    %c0_6 = arith.constant 0 : index
    %c0_7 = arith.constant 0 : index
    %8 = vector.load %arg5[%c0_6, %c0_7] : memref<128x128xf32, #tpu.memory_space<vmem>>, vector<128x128xf32>
    tpu.vector_store %arg5[%c0_6, %c0_7], %7 {strides = array<i32>} : memref<128x128xf32, #tpu.memory_space<vmem>>, vector<128x128xf32>,
    %c0_i32_8 = arith.constant 0 : i32
    %9 = arith.cmpi eq, %arg1, %c0_i32_8 : i32
    %10 = arith.extui %9 : i1 to i32
    %c0_i32_9 = arith.constant 0 : i32
    %11 = arith.cmpi ne, %10, %c0_i32_9 : i32
    scf.if %11 {
      %c0_10 = arith.constant 0 : index
      %c0_11 = arith.constant 0 : index
      %12 = vector.load %arg5[%c0_10, %c0_11] : memref<128x128xf32, #tpu.memory_space<vmem>>, vector<128x128xf32>
      %13 = arith.truncf %12 : vector<128x128xf32> to vector<128x128xbf16>
      %c0_12 = arith.constant 0 : index
      %c0_13 = arith.constant 0 : index
      %14 = vector.load %arg4[%c0_12, %c0_13] : memref<128x128xbf16, #tpu.memory_space<vmem>>, vector<128x128xbf16>
      tpu.vector_store %arg4[%c0_12, %c0_13], %13 {strides = array<i32>} : memref<128x128xbf16, #tpu.memory_space<vmem>>, vector<128x128xbf16>,
    } else {
    }
    return
  }
  func.func @transform_0(%arg0: i32, %arg1: i32) -> (i32, i32) {
    %c0_i32 = arith.constant 0 : i32
    return %arg0, %arg1 : i32, i32
  }
  func.func @transform_1(%arg0: i32, %arg1: i32) -> (i32, i32) {
    %c0_i32 = arith.constant 0 : i32
    %c0_i32_0 = arith.constant 0 : i32
    return %arg1, %c0_i32 : i32, i32
  }
  func.func @transform_2(%arg0: i32, %arg1: i32) -> (i32, i32) {
    %c0_i32 = arith.constant 0 : i32
    %c0_i32_0 = arith.constant 0 : i32
    return %arg0, %c0_i32 : i32, i32
  }
}

</mosaic_0001>

<bundles_post_ra>
// kernel: tpu_custom_call.1
= control target key start
LH: loop header
LB: loop body
LE: loop exit
PB: predicated region body
PF: predicated region fallthrough
CT: control target
= control target key end

     0   :  { %7 = vsyncpa [#allocation4], 0  ;;  %s1383_s0 = inlined_call_operand.hbm [shape: bf16[256,128], index: 0, kind: input, shape index: {}]   ;;  %s1384_s1 = inlined_call_operand.hbm [shape: bf16[128,128], index: 1, kind: input, shape index: {}]   ;;  %s1385_s2 = inlined_call_operand.hbm [shape: bf16[256,128], index: 2, kind: output, shape index: {}]  }
   0x1   :  { %9 = vsyncpa [#allocation4 + $0x1], 0 }
   0x2   :  { %10 = vsyncpa [#allocation7], 0 }
   0x3   :  { %11 = vsyncpa [#allocation5], 0 }
   0x4   :  { %13 = vsyncpa [#allocation5 + $0x1], 0  ;;  %s1144_s9 = smov 0   ;;  %s1146_s10 = smov 0  }
   0x5   :  { %s1148_s11 = smov 0   ;;  %s1150_s12 = smov 0  }
   0x6   :  { %s1152_s13 = smov 0   ;;  %s1154_s14 = smov 0  }
   0x7 LB: > { %s705_s15 = sadd.s32 4294967295, %s1120_s14   ;;  %s706_s16 = sadd.s32 4294967294, %s1120_s14   ;;  %s1120_s14 = sphi %s1154_s14, %s19_s14   ;;  %s1116_s13 = sphi %s1152_s13, %s1409_s13   ;;  %s1112_s12 = sphi %s1150_s12, %s1408_s12   ;;  %s1108_s11 = sphi %s1148_s11, %s1407_s11   ;;  %s1104_s10 = sphi %s1146_s10, %s1406_s10   ;;  %s1100_s9 = sphi %s1144_s9, %s1405_s9  }
   0x8   : > { %p53_p0 = scmp.ne.s32.totalorder %s1104_s10, %s1100_s9  ;;  %p1178_p1 = scmp.eq.s32.totalorder %s705_s15, 0 }
   0x9   : > { %p1182_p2 = scmp.eq.s32.totalorder %s705_s15, 1  ;;  %p109_p3 = scmp.eq.s32.totalorder %s706_s16, 1 }
   0xa   : > { %s1390_s17 = scalar_select %p1178_p1, 1, 0 }
   0xb   : > { %s1391_s18 = scalar_select %p1182_p2, 1, 0 }
   0xc   : > { %p1188_p4 = por %p1178_p1, %p53_p0  ;;  %p707_p5 = scmp.ge.s32.totalorder %s1120_s14, 1 }
   0xd   : > { %p1193_p6 = por %p109_p3, %p53_p0  ;;  %p116_p7 = scmp.lt.s32.totalorder %s1120_s14, 3 }
   0xe   : > { %s1392_s19 = scalar_select %p1188_p4, 1, 0 }
   0xf   : > { %s1393_s20 = scalar_select %p1193_p6, 1, 0 }
  0x10   : > { %p1198_p8 = pnand %p707_p5, %p116_p7  ;;  %s1122_s22 = smov [#allocation6]  }
  0x11   : > { %s131_s23 = sshll.u32 %s1122_s22, 4  ;;  %s31_s25 = sadd.s32 1, %s1116_s13  ;;  %s132_s23 = int_to_ptr.vmem [resolvable:$true] %s131_s23 }
  0x12   : > { %s1394_s21 = scalar_select %p1198_p8, 1, 0 }
  0x13   : > { %p891_p9 = pneg %p1198_p8  ;;  %s976_s28 = scalar_lea.hbm %s1384_s1, 1024 }
  0x14   : > { %p977_p12 = scmp.ne.s32.totalorder %s1384_s1, %s976_s28  ;;  %p983_p5 = scmp.lt.u32.totalorder %s976_s28, %s1384_s1 }
  0x15   : > { %p1207_p11 = pnand %p891_p9, %p1178_p1 }
  0x17   : > { %p978_p13 = pneg %p1207_p11 }
  0x19   : > { %p979_p0 = pnand %p978_p13, %p977_p12 }
  0x1b   : > { %p980_p3 = pneg %p979_p0 }
  0x1d   : > { %p985_p7 = pnand %p983_p5, %p980_p3 }
  0x1f   : > { %988 = shalt.err (!%p985_p7)
}
  0x20   : > { %s989_s5 = scalar_lea.vmem %s132_s23, 1024  ;;  %p997_p1 = scmp.lt.s32.totalorder %s132_s23, %s132_s23 }
  0x21   : > { %p990_p9 = scmp.ne.s32.totalorder %s132_s23, %s989_s5  ;;  %p998_p4 = scmp.lt.s32.totalorder %s989_s5, %s989_s5 }
  0x23   : > { %p992_p10 = pnand %p990_p9, %p978_p13  ;;  %p999_p8 = por %p998_p4, %p997_p1 }
  0x25   : > { %p993_p6 = pneg %p992_p10 }
  0x27   : > { %p1000_p2 = pnand %p999_p8, %p993_p6 }
  0x29   : > { %1003 = shalt.err (!%p1000_p2)
}
  0x2a   : > { %s1123_s6 = smov 64   ;;  %s1124_s7 = smov 4  }
  0x2b   : > { %894 = dma.hbm_to_vmem [thread:$0]  (!%p1207_p11), %s1384_s1, 1024, %s132_s23, [#allocation7], %s1123_s6, %s1123_s6, %s1124_s7  }
  0x2c   : > { %p33_p1 = scmp.ge.s32.totalorder %s31_s25, 2  ;;  %s40_s16 = sadd.s32 1, %s1108_s11 }
  0x2d   : > { %p47_p2 = scmp.ne.s32.totalorder %s1108_s11, %s1104_s10  ;;  %p48_p4 = scmp.eq.s32.totalorder %s1120_s14, 0 }
  0x2e   : > { %s1411_s25 = smov (%p33_p1, %s31_s25), 0  ;;  %p1397_p8 = scmp.ne.s32.totalorder %s1391_s18, 0 }
  0x2f   : > { %p1237_p6 = por %p48_p4, %p47_p2  ;;  %s35_s26 = ssub.s32 %s1116_s13, %s1411_s25 }
  0x30   : > { %p1243_p10 = por %p1397_p8, %p47_p2  ;;  %p904_p12 = scmp.lt.s32.totalorder %s1120_s14, 2 }
  0x31   : > { %p38_p11 = scmp.eq.s32.totalorder %s35_s26, 0  ;;  %s145_s23 = sand.u32 1, %s1108_s11  }
  0x32   : > { %s710_s27 = sshll.u32 %s145_s23, 6  ;;  %s754_s29 = sshll.u32 %s1116_s13, 10 }
  0x33   : > { %s1252_s28 = scalar_select %p38_p11, %s1108_s11, %s40_s16  }
  0x34   : > { %s1258_s4 = scalar_lea.hbm %s1383_s0, %s754_s29  ;;  %s149_s18 = scalar_lea.vmem [#allocation3], %s710_s27 }
  0x35   : > { %s157_s5 = sshll.u32 %s149_s18, 4  ;;  %p1264_p13 = pnand %p904_p12, %p1237_p6  ;;  %s1260_s5 = int_to_ptr.vmem [resolvable:$true] %s157_s5 }
  0x36   : > { %s1268_s15 = scalar_lea.sflag [#allocation4], %s145_s23  ;;  %s1004_s16 = scalar_lea.hbm %s1258_s4, 1024 }
  0x37   : > { %p1005_p0 = scmp.ne.s32.totalorder %s1258_s4, %s1004_s16  ;;  %p1006_p3 = pneg %p1264_p13 }
  0x38   : > { %s1009_s22 = scalar_lea.hbm %s1383_s0, 2048  ;;  %p1010_p9 = scmp.lt.u32.totalorder %s1258_s4, %s1383_s0 }
  0x39   : > { %p1007_p5 = pnand %p1006_p3, %p1005_p0  ;;  %p1011_p1 = scmp.lt.u32.totalorder %s1009_s22, %s1004_s16 }
  0x3a   : > { %p1013_p4 = scmp.lt.u32.totalorder %s1004_s16, %s1258_s4 }
  0x3b   : > { %p1008_p7 = pneg %p1007_p5  ;;  %p1012_p2 = por %p1011_p1, %p1010_p9 }
  0x3d   : > { %p1014_p6 = por %p1013_p4, %p1012_p2 }
  0x3f   : > { %p1015_p8 = pnand %p1014_p6, %p1008_p7 }
  0x41   : > { %1018 = shalt.err (!%p1015_p8)
}
  0x42   : > { %s1019_s23 = scalar_lea.vmem %s1260_s5, 1024  ;;  %s1125_s3 = smov [#allocation3]  }
  0x43   : > { %p1020_p12 = scmp.ne.s32.totalorder %s1260_s5, %s1019_s23  ;;  %s1024_s18 = sshll.u32 %s1125_s3, 4  ;;  %s1025_s18 = int_to_ptr.vmem [resolvable:$false] %s1024_s18 }
  0x44   : > { %s1026_s26 = scalar_lea.vmem %s1025_s18, 2048  ;;  %p1027_p5 = scmp.lt.s32.totalorder %s1260_s5, %s1025_s18 }
  0x45   : > { %p1022_p11 = pnand %p1020_p12, %p1006_p3  ;;  %p1028_p9 = scmp.lt.s32.totalorder %s1026_s26, %s1019_s23 }
  0x47   : > { %p1023_p0 = pneg %p1022_p11  ;;  %p1029_p1 = por %p1028_p9, %p1027_p5 }
  0x49   : > { %p1030_p2 = pnand %p1029_p1, %p1023_p0 }
  0x4b   : > { %1033 = shalt.err (!%p1030_p2)
}
  0x4c   : > { %898 = dma.hbm_to_vmem [thread:$0]  (!%p1264_p13), %s1258_s4, 1024, %s1260_s5, %s1268_s15, %s1123_s6, %s1123_s6, %s1124_s7  }
  0x4d   : > { %p1400_p3 = scmp.ne.s32.totalorder %s1394_s21, 0 }
  0x4e   : > { %s1302_s16 = sand.u32 (!%p1400_p3), 1, %s1104_s10   ;;  %p1401_p7 = scmp.ne.s32.totalorder (!%p1400_p3), %s1392_s19, 0 }
  0x4f   : > { %169 = sbr.rel (%p1400_p3) target bundleno = 363 (0x16b), region = 28  ;;  %s714_s27 = sshll.u32 (!%p1400_p3), %s1302_s16, 6 }
  0x50   : > { %s172_s22 = scalar_lea.sflag (!%p1400_p3), [#allocation4], %s1302_s16  ;;  %s1308_s8 = scalar_lea.vmem (!%p1400_p3), [#allocation3], %s714_s27 }
  0x56   : > { %1087 = dma.done.wait (%p1401_p7), %s172_s22, 1024  }
  0x57   : > { %1089 = vsyncadd (%p1401_p7), %s172_s22, 4294966272  ;;  %p1402_p13 = scmp.ne.s32.totalorder %s1390_s17, 0 }
  0x59   : > { %1091 = dma.done.wait (%p1402_p13), [#allocation7], 1024  }
  0x5a   : > { %1093 = vsyncadd (%p1402_p13), [#allocation7], 4294966272  ;;  %v960_v0 = vld [vmem:[#allocation6] sm:$0xff]   ;;  %v961_v1 = vld [vmem:[#allocation6 + $0x8] sm:$0xff]   ;;  %s199_s17 = scalar_lea.vmem [#allocation8], %s714_s27  ;;  %s771_s21 = sshll.u32 %s1112_s12, 10 }
  0x5b   : > { %835 = vmatprep.subr.bf16.mxu0 %v960_v0  ;;  %867 = vmatprep.subr.bf16.mxu1 %v960_v0  ;;  %v962_v2 = vld [vmem:[#allocation6 + $0x10] sm:$0xff]   ;;  %v963_v3 = vld [vmem:[#allocation6 + $0x18] sm:$0xff]   ;;  %v968_v4 = vld [vmem:[%s1308_s8] sm:$0xff]   ;;  %s610_s19 = sshll.u32 %s199_s17, 4  ;;  %s1334_s4 = scalar_lea.hbm %s1385_s2, %s771_s21  ;;  %s1329_s19 = int_to_ptr.vmem [resolvable:$true] %s610_s19 }
  0x5c   : > { %836 = vmatpush3.bf16.msra.mxu0 %v960_v0  ;;  %875 = vmatpush3.bf16.msra.mxu1 %v960_v0  ;;  %v969_v5 = vld [vmem:[%s1308_s8 + $0x20] sm:$0xff]   ;;  %v965_v7 = vld [vmem:[#allocation6 + $0x28] sm:$0xff]   ;;  %v966_v8 = vld [vmem:[#allocation6 + $0x30] sm:$0xff]   ;;  %s597_s12 = scalar_lea.sflag [#allocation5], %s1302_s16  ;;  %s1034_s5 = scalar_lea.vmem %s1329_s19, 1024 }
  0x5d   : > { %837 = vmatprep.subr.bf16.mxu0 %v961_v1  ;;  %868 = vmatprep.subr.bf16.mxu1 %v961_v1  ;;  %v964_v6 = vld [vmem:[#allocation6 + $0x20] sm:$0xff]   ;;  %v967_v9 = vld [vmem:[#allocation6 + $0x38] sm:$0xff]   ;;  %v970_v10 = vld [vmem:[%s1308_s8 + $0x8] sm:$0xff]   ;;  %p1035_p4 = scmp.ne.s32.totalorder %s1329_s19, %s1034_s5  ;;  %s1126_s15 = smov [#allocation8]  }
  0x5e   : > { %851 = vmatprep.mubr.bf16.mxu0 %v968_v4  ;;  %859 = vmatprep.mubr.bf16.mxu1 %v969_v5  ;;  %v971_v11 = vld [vmem:[%s1308_s8 + $0x28] sm:$0xff]   ;;  %v972_v12 = vld [vmem:[%s1308_s8 + $0x10] sm:$0xff]   ;;  %v974_v14 = vld [vmem:[%s1308_s8 + $0x18] sm:$0xff]   ;;  %s1038_s29 = sshll.u32 %s1126_s15, 4  ;;  %s1039_s29 = int_to_ptr.vmem [resolvable:$false] %s1038_s29 }
  0x5f   : > { %v973_v13 = vld [vmem:[%s1308_s8 + $0x30] sm:$0xff]   ;;  %v975_v15 = vld [vmem:[%s1308_s8 + $0x38] sm:$0xff]   ;;  %p1036_p6 = pnand %p1035_p4, %p1243_p10  ;;  %s1040_s30 = scalar_lea.vmem %s1039_s29, 2048 }
  0x60   : > { %838 = vmatpush3.bf16.msra.mxu0 %v961_v1  ;;  %876 = vmatpush3.bf16.msra.mxu1 %v961_v1  ;;  %p1041_p12 = scmp.lt.s32.totalorder %s1329_s19, %s1039_s29  ;;  %p1042_p11 = scmp.lt.s32.totalorder %s1040_s30, %s1034_s5 }
  0x61   : > { %839 = vmatprep.subr.bf16.mxu0 %v962_v2  ;;  %869 = vmatprep.subr.bf16.mxu1 %v962_v2  ;;  %p1037_p8 = pneg %p1036_p6 }
  0x62   : > { %p1043_p0 = por %p1042_p11, %p1041_p12 }
  0x64   : > { %840 = vmatpush3.bf16.msra.mxu0 %v962_v2  ;;  %877 = vmatpush3.bf16.msra.mxu1 %v962_v2  ;;  %p1044_p5 = pnand %p1043_p0, %p1037_p8 }
  0x65   : > { %841 = vmatprep.subr.bf16.mxu0 %v963_v3  ;;  %870 = vmatprep.subr.bf16.mxu1 %v963_v3 }
  0x68   : > { %842 = vmatpush3.bf16.msra.mxu0 %v963_v3  ;;  %878 = vmatpush3.bf16.msra.mxu1 %v963_v3 }
  0x69   : > { %843 = vmatprep.subr.bf16.mxu0 %v964_v6  ;;  %871 = vmatprep.subr.bf16.mxu1 %v964_v6 }
  0x6c   : > { %844 = vmatpush3.bf16.msra.mxu0 %v964_v6  ;;  %879 = vmatpush3.bf16.msra.mxu1 %v964_v6 }
  0x6d   : > { %845 = vmatprep.subr.bf16.mxu0 %v965_v7  ;;  %872 = vmatprep.subr.bf16.mxu1 %v965_v7 }
  0x70   : > { %846 = vmatpush3.bf16.msra.mxu0 %v965_v7  ;;  %880 = vmatpush3.bf16.msra.mxu1 %v965_v7 }
  0x71   : > { %847 = vmatprep.subr.bf16.mxu0 %v966_v8  ;;  %873 = vmatprep.subr.bf16.mxu1 %v966_v8 }
  0x74   : > { %848 = vmatpush3.bf16.msra.mxu0 %v966_v8  ;;  %881 = vmatpush3.bf16.msra.mxu1 %v966_v8 }
  0x75   : > { %849 = vmatprep.subr.bf16.mxu0 %v967_v9  ;;  %874 = vmatprep.subr.bf16.mxu1 %v967_v9 }
  0x78   : > { %850 = vmatpush3.bf16.msra.mxu0 %v967_v9  ;;  %882 = vmatpush3.bf16.msra.mxu1 %v967_v9 }
  0x7b   : > { %852 = vmatmul.mubr.bf16.vlgmr.msra.gmra.mrb[0].mxu0 %v970_v10  ;;  %860 = vmatmul.mubr.bf16.vlgmr.msra.gmra.mrb[0].mxu1 %v971_v11 }
  0x7c   : > { %855 = vmatprep.mubr.bf16.mxu0 %v972_v12  ;;  %863 = vmatprep.mubr.bf16.mxu1 %v973_v13 }
  0x83   : > { %856 = vmatmul.mubr.bf16.gmra.mrb[4].mxu0 %v974_v14  ;;  %864 = vmatmul.mubr.bf16.gmra.mrb[4].mxu1 %v975_v15 }
 0x14e   : > { %v853_v16 = vpop.f32.mrb[0].mxu0  ;;  %v861_v17 = vpop.f32.mrb[0].mxu1 }
 0x14f   : > { %v402_v18 = vpop.f32.mrb[1].mxu0  ;;  %v434_v19 = vpop.f32.mrb[1].mxu1 }
 0x150   : > { %v854_v20 = vpop.f32.mrb[2].mxu0  ;;  %v862_v21 = vpop.f32.mrb[2].mxu1 }
 0x151   : > { %v780_v22 = vpack.c.bf16 %v854_v20, %v853_v16  ;;  %v800_v23 = vpack.c.bf16 %v862_v21, %v861_v17  ;;  %v405_v24 = vpop.f32.mrb[3].mxu0  ;;  %v437_v25 = vpop.f32.mrb[3].mxu1 }
 0x152   : > { %v775_v26 = vpack.c.bf16 %v405_v24, %v402_v18  ;;  %v795_v27 = vpack.c.bf16 %v437_v25, %v434_v19 }
 0x153   : > { %812 = vst [vmem:[%s199_s17 + $0x8] sm:$0xff] %v780_v22   ;;  %816 = vst [vmem:[%s199_s17 + $0x28] sm:$0xff] %v800_v23  }
 0x154   : > { %776 = vst [vmem:[%s199_s17] sm:$0xff] %v775_v26   ;;  %815 = vst [vmem:[%s199_s17 + $0x20] sm:$0xff] %v795_v27  }
 0x156   : > { %v857_v28 = vpop.f32.mrb[4].mxu0  ;;  %v865_v29 = vpop.f32.mrb[4].mxu1 }
 0x157   : > { %v418_v30 = vpop.f32.mrb[5].mxu0  ;;  %v450_v31 = vpop.f32.mrb[5].mxu1 }
 0x158   : > { %v858_v32 = vpop.f32.mrb[6].mxu0  ;;  %v866_v33 = vpop.f32.mrb[6].mxu1 }
 0x159   : > { %v790_v34 = vpack.c.bf16 %v858_v32, %v857_v28  ;;  %v810_v35 = vpack.c.bf16 %v866_v33, %v865_v29  ;;  %v421_v36 = vpop.f32.mrb[7].mxu0  ;;  %v453_v37 = vpop.f32.mrb[7].mxu1 }
 0x15a   : > { %v785_v38 = vpack.c.bf16 %v421_v36, %v418_v30  ;;  %v805_v39 = vpack.c.bf16 %v453_v37, %v450_v31 }
 0x15b   : > { %814 = vst [vmem:[%s199_s17 + $0x18] sm:$0xff] %v790_v34   ;;  %818 = vst [vmem:[%s199_s17 + $0x38] sm:$0xff] %v810_v35  }
 0x15c   : > { %813 = vst [vmem:[%s199_s17 + $0x10] sm:$0xff] %v785_v38   ;;  %817 = vst [vmem:[%s199_s17 + $0x30] sm:$0xff] %v805_v39  }
 0x15d   : > { %1047 = shalt.err (!%p1044_p5)
}
 0x15e   : > { %s1048_s23 = scalar_lea.hbm %s1334_s4, 1024  ;;  %s1052_s26 = scalar_lea.hbm %s1385_s2, 2048 }
 0x15f   : > { %p1049_p9 = scmp.ne.s32.totalorder %s1334_s4, %s1048_s23  ;;  %p1053_p3 = scmp.lt.u32.totalorder %s1334_s4, %s1385_s2 }
 0x160   : > { %p1054_p7 = scmp.lt.u32.totalorder %s1052_s26, %s1048_s23  ;;  %p1056_p4 = scmp.lt.u32.totalorder %s1048_s23, %s1334_s4 }
 0x161   : > { %p1050_p1 = pnand %p1049_p9, %p1243_p10 }
 0x162   : > { %p1055_p13 = por %p1054_p7, %p1053_p3 }
 0x163   : > { %p1051_p2 = pneg %p1050_p1 }
 0x164   : > { %p1057_p6 = por %p1056_p4, %p1055_p13 }
 0x166   : > { %p1058_p8 = pnand %p1057_p6, %p1051_p2 }
 0x168   : > { %1061 = shalt.err (!%p1058_p8)
}
 0x169   : > { %s1127_s8 = smov 64   ;;  %s1128_s17 = smov 4  }
 0x16a   : > { %889 = dma.vmem_to_hbm [thread:$0]  (%p1243_p10), %s1329_s19, 1024, %s1334_s4, %s597_s12, %s1127_s8, %s1127_s8, %s1128_s17  }
 0x16b PF: > { %s625_s21 = sand.u32 1, %s1100_s9   ;;  %p1403_p12 = scmp.ne.s32.totalorder %s1393_s20, 0 }
 0x16c   : > { %p1404_p11 = scmp.ge.s32.totalorder %s1120_s14, 2  ;;  %s626_s6 = scalar_lea.sflag [#allocation5], %s625_s21 }
 0x16e   : > { %p900_p0 = pnand %p1404_p11, %p1403_p12 }
 0x170   : > { %1095 = dma.done.wait (!%p900_p0), %s626_s6, 1024  }
 0x171   : > { %1097 = vsyncadd (!%p900_p0), %s626_s6, 4294966272  ;;  %s19_s14 = sadd.s32 1, %s1120_s14   ;;  %s1405_s9 = smov %s1104_s10 }
 0x172   : > { %p16_p5 = scmp.ge.s32.totalorder %s19_s14, 4   ;;  %s1406_s10 = smov %s1108_s11 }
 0x173   : > { %s1407_s11 = smov %s1252_s28  ;;  %s1408_s12 = smov %s1116_s13 }
 0x174   : > { %s1409_s13 = smov %s1411_s25  ;;  %18 = sbr.rel (!%p16_p5) target bundleno = 7 (0x7), region = 86 }
 0x17b   :  { %631 = vsyncpa [#allocation4], 1 }
 0x17c   :  { %633 = vsyncpa [#allocation4 + $0x1], 1 }
 0x17d   :  { %634 = vsyncpa [#allocation7], 1 }
 0x17e   :  { %635 = vsyncpa [#allocation5], 1 }
 0x17f   :  { %637 = vsyncpa [#allocation5 + $0x1], 1 }

</bundles_post_ra>
